<compile_context>
chip_gen: v5e
topology: v5e:2x2
jax: 0.10.0
libtpu: 0.0.40
codegen_flags: <defaults>
</compile_context>

<pallas_src>
import math
from functools import partial

import numpy as np
import jax
import jax.numpy as jnp
from jax.experimental import pallas as pl
from jax.experimental.pallas import tpu as pltpu

_D1, _D2 = 3, 10


def _round_up(v, m):
    return -(-v // m) * m


def _padded_block_bytes(shape, dtype):
    """VMEM footprint of ONE buffer of a block: the last two dims are tiled to
    (sublane, 128) with sublane = 8 for 4-byte dtypes, 16 for 2-byte dtypes."""
    itemsize = np.dtype(dtype).itemsize
    sub = max(8, 32 // itemsize)
    if len(shape) < 2:
        return _round_up(int(np.prod(shape, dtype=np.int64)) * itemsize, 512)
    lead = int(np.prod(shape[:-2], dtype=np.int64)) if len(shape) > 2 else 1
    return lead * _round_up(shape[-2], sub) * _round_up(shape[-1], 128) * itemsize


def _vmem_limits():
    """Returns (vmem_limit_bytes for CompilerParams, block budget for tile picker)."""
    phys = 64 << 20                                   # conservative default (v7x physical)
    try:
        phys = int(getattr(pltpu.get_tpu_info(), "vmem_capacity_bytes", phys))
    except Exception:
        pass
    limit = min(phys * 3 // 4, 100 << 20)             # ~96 MiB on v5e/v6e, 48 MiB on v7x
    budget = max(limit - (6 << 20), 8 << 20)          # headroom for compiler scratch
    return limit, budget


def _pick_batch_tile(B, F, Cp, W, n_out, x_dtype, budget_bytes):
    """Largest batch tile whose *padded* VMEM footprint (double-buffered inputs,
    resident weights, f32 intermediates) fits the budget.  Caps TB at ceil(B/2) for
    B >= 16 so the 'parallel' grid axis has >= 2 steps (v7x 2-TensorCore sharding)."""
    K1 = _D1 * (W - 1)

    def fits(tb):
        r = tb * Cp
        xb = 2 * _padded_block_bytes((tb, F, Cp, W), x_dtype)          # double-buffered
        pwb = 2 * _padded_block_bytes((tb, Cp), jnp.float32)
        outb = 2 * _padded_block_bytes((tb, n_out), jnp.float32)
        wts = 2 * (_padded_block_bytes((F, W, K1), jnp.float32)
                   + _padded_block_bytes((K1, _D2), jnp.float32)
                   + 3 * _padded_block_bytes((1, K1), jnp.float32))
        interm = (_padded_block_bytes((tb, F, Cp, W), jnp.float32)     # f32 upcast of x
                  + 8 * r * 128 * 4)                                   # xf/h1/h2/softmax temps
        return xb + pwb + outb + wts + interm <= budget_bytes

    if B <= 8:
        return B
    cap = B if B < 16 else -(-B // 2)                 # force nb >= 2 when B >= 16
    cap = min(cap, max(8, 8192 // max(Cp, 1)))        # keep R = TB*Cp (matmul rows) bounded
    divisors = [tb for tb in range(8, min(B, cap) + 1, 8)
                if B % tb == 0 and fits(tb)]
    if divisors:
        return max(divisors)
    start = min(B - B % 8, cap - cap % 8)
    for tb in range(start, 7, -8):
        if fits(tb):
            return tb                                 # grid = cdiv, tail block is masked
    return 8


def _eiie_softmax_kernel(x_ref, pw_ref, m1_ref, b1_ref, w2_ref, b2_ref, w3_ref,
                         scal_ref, out_ref, *, n_coins, compute_dtype):
    """Fused EIIE forward + cash-bias + softmax for one batch tile.

    x_ref:   (TB, F, Cp, W)  raw prices (original NCHW layout; maybe bf16)
    pw_ref:  (TB, Cp)        previous portfolio weights (padded coins = 0)
    m1_ref:  (F, W, K1)      per-feature banded conv1 weights; b1_ref: (1, K1)
    w2_ref:  (K1, D2)        conv2 weights;                    b2_ref: (1, D2)
    w3_ref:  (1, D2)         conv3 weights for the hidden channels
    scal_ref:(1, 3)  SMEM    [w3_prev_w, b3, cash_bias]
    out_ref: (TB, n_coins+1) softmax over (cash + coins)
    """
    TB, F, Cp, W = x_ref.shape
    R = TB * Cp

    x = x_ref[...].astype(jnp.float32)                           # upcast if fed as bf16
    # price normalization: divide every (b, c) series by the feature-0 last value.
    inv = pl.reciprocal(x[:, 0, :, W - 1:W], approx=False)       # (TB, Cp, 1)

    # conv1 (1x2): per-feature banded matmuls accumulated in f32 on the MXU.
    # (No lane-concat of the F feature slices: the MXU pads the contraction dim to
    #  128 anyway, so F small matmuls cost about the same and we skip XLU lane shifts.)
    h1 = None
    for f in range(F):
        xf = (x[:, f, :, :] * inv).reshape(R, W)                 # layout no-op (Cp % 8 == 0)
        part = jnp.dot(xf.astype(compute_dtype), m1_ref[f],
                       preferred_element_type=jnp.float32)
        h1 = part if h1 is None else h1 + part
    h1 = jnp.maximum(h1 + b1_ref[...], 0.0)                      # (R, D1*(W-1))

    # conv2 (1x(W-1)) collapses the window dim -> dense matmul + ReLU
    h2 = jnp.dot(h1.astype(compute_dtype), w2_ref[...],
                 preferred_element_type=jnp.float32) + b2_ref[...]
    h2 = jnp.maximum(h2, 0.0)                                    # (R, D2)

    # conv3 (1x1) over channels [h2 (D2), prev_w (1)] -> per-coin score
    D2 = h2.shape[-1]
    h2b = h2.reshape(TB, Cp, D2)                                 # layout no-op (Cp % 8 == 0)
    w3_prev = scal_ref[0, 0]
    b3v = scal_ref[0, 1]
    cash_b = scal_ref[0, 2]
    score = jnp.sum(h2b * w3_ref[...], axis=-1)                  # (TB, Cp)
    score = score + pw_ref[...] * w3_prev + b3v
    if n_coins != Cp:                                            # drop padded coins
        score = score[:, :n_coins]

    # 'voting': prepend cash-bias column, then softmax -- fused, no HBM round trip.
    cash = jnp.full((TB, 1), cash_b, jnp.float32)
    logits = jnp.concatenate([cash, score], axis=-1)             # (TB, n_coins+1)
    m = jnp.max(logits, axis=-1, keepdims=True)
    e = jnp.exp(logits - m)
    # approx=True -> pure EUP vrcp; no VPU Newton step in the VPU-only epilogue.
    denom_inv = pl.reciprocal(jnp.sum(e, axis=-1, keepdims=True), approx=True)
    out_ref[...] = e * denom_inv


def init_params(key, F, C, W):
    """Same parameter shapes as the PyTorch module; deterministic synthetic init."""
    D1, D2 = _D1, _D2
    ks = jax.random.split(key, 6)

    def u(k, shape, fan_in):
        bound = 1.0 / math.sqrt(fan_in)
        return jax.random.uniform(k, shape, jnp.float32, -bound, bound)

    W1 = u(ks[0], (D1, F, 1, 2), F * 2)
    b1 = u(ks[1], (D1,), F * 2)
    W2 = u(ks[2], (D2, D1, 1, W - 1), D1 * (W - 1))
    b2 = u(ks[3], (D2,), D1 * (W - 1))
    W3 = u(ks[4], (1, D2 + 1, 1, 1), D2 + 1)
    b3 = u(ks[5], (1,), D2 + 1)
    bias = jnp.zeros((1,), jnp.float32)               # nn.Parameter(torch.zeros(1))
    return (W1, b1, W2, b2, W3, b3, bias)


def network_forward(x, prev_w, params, *, matmul_dtype=jnp.float32):
    """Full forward pass (equivalent to Network.forward).

    x may be fed as bfloat16 to halve the dominant HBM traffic (it is upcast to f32
    inside the kernel before any arithmetic, so this is valid on v5e too).  Keep
    matmul_dtype=f32 on v5e: the contraction dims (48/45) leave the MXU mostly idle,
    so bf16 matmul casts only add VPU pack ops there.
    """
    W1, b1, W2, b2, W3, b3, bias = params
    B, F, C, Wn = x.shape
    D1, D2 = W1.shape[0], W2.shape[0]
    K1 = D1 * (Wn - 1)

    # Pad the coin dim to a multiple of 8 so every in-kernel (TB,Cp,*) <-> (TB*Cp,*)
    # regroup is a layout no-op (no re-tiled VMEM copies, e.g. for C=11).  Padded
    # coins get price 1 / weight 0 and are sliced off before the softmax in-kernel.
    Cp = _round_up(C, 8)
    if Cp != C:
        x = jnp.pad(x, ((0, 0), (0, 0), (0, Cp - C), (0, 0)), constant_values=1.0)
        prev_w = jnp.pad(prev_w, ((0, 0), (0, Cp - C)))

    # --- glue: turn conv weights into matmul-form matrices (tiny, done once) ---
    # shifts[k, w, v] = 1 iff w == v + k  -> conv1 cross-correlation, kernel size 2.
    shifts = jnp.stack([jnp.eye(Wn, Wn - 1, 0, dtype=jnp.float32),
                        jnp.eye(Wn, Wn - 1, -1, dtype=jnp.float32)])      # (2, W, W-1)
    M1 = jnp.einsum('dfk,kwv->fwdv', W1[:, :, 0, :], shifts).reshape(F, Wn, K1)
    b1_row = jnp.repeat(b1, Wn - 1)[None, :]                              # (1, K1)
    W2f = jnp.transpose(W2[:, :, 0, :], (1, 2, 0)).reshape(K1, D2)        # (K1, D2)
    b2_row = b2[None, :]                                                  # (1, D2)
    w3_row = W3[0, :D2, 0, 0][None, :]                                    # (1, D2)
    scal = jnp.stack([W3[0, D2, 0, 0], b3[0], bias[0]])[None, :]          # (1, 3)

    M1 = M1.astype(matmul_dtype)
    W2f = W2f.astype(matmul_dtype)

    vmem_limit, vmem_budget = _vmem_limits()
    TB = _pick_batch_tile(B, F, Cp, Wn, C + 1, x.dtype, vmem_budget)
    nb = pl.cdiv(B, TB)

    rows = B * Cp
    weight_bytes = ((M1.size + W2f.size) * M1.dtype.itemsize
                    + 4 * (b1_row.size + b2_row.size + w3_row.size + scal.size))
    cost = pl.CostEstimate(
        flops=2 * rows * (F * Wn * K1 + K1 * D2 + D2) + 10 * B * (C + 1),
        transcendentals=B * (C + 1) + rows + B,
        bytes_accessed=(x.size * x.dtype.itemsize + 4 * prev_w.size
                        + 4 * B * (C + 1) + weight_bytes),
    )

    out = pl.pallas_call(
        partial(_eiie_softmax_kernel, n_coins=C, compute_dtype=matmul_dtype),
        out_shape=jax.ShapeDtypeStruct((B, C + 1), jnp.float32),
        grid=(nb,),
        in_specs=[
            # x stays in its PyTorch NCHW layout; pipeline_mode=pl.Buffered(3) is a
            # further tuning knob here if DMA start/stop bubbles show in a trace.
            pl.BlockSpec((TB, F, Cp, Wn), lambda i: (i, 0, 0, 0)),
            pl.BlockSpec((TB, Cp), lambda i: (i, 0)),               # prev_w
            pl.BlockSpec((F, Wn, K1), lambda i: (0, 0, 0)),         # M1 (resident)
            pl.BlockSpec((1, K1), lambda i: (0, 0)),                # b1
            pl.BlockSpec((K1, D2), lambda i: (0, 0)),               # W2
            pl.BlockSpec((1, D2), lambda i: (0, 0)),                # b2
            pl.BlockSpec((1, D2), lambda i: (0, 0)),                # w3 (hidden channels)
            pl.BlockSpec(memory_space=pltpu.MemorySpace.SMEM),      # [w3_prev, b3, cash]
        ],
        # Output block stays (TB, C+1); the output is ~2% of HBM traffic here, so the
        # masked (lane-sparse) store is not the binding slot -- see header comment.
        out_specs=pl.BlockSpec((TB, C + 1), lambda i: (i, 0)),
        compiler_params=pltpu.CompilerParams(
            dimension_semantics=("parallel",),
            vmem_limit_bytes=int(vmem_limit)),
        cost_estimate=cost,
    )(x, prev_w, M1, b1_row, W2f, b2_row, w3_row, scal)
    return out
    # TODO(synk): the module's `recorded`/`recording` dict of intermediate activations
    # is Python-side bookkeeping; only the final forward output is produced here.


def reference_forward(x, prev_w, params):
    """Pure-JAX replica of the PyTorch forward, for correctness checking."""
    W1, b1, W2, b2, W3, b3, bias = params
    B = x.shape[0]
    xn = x / x[:, 0:1, :, -1:]
    x0, x1 = xn[..., :-1], xn[..., 1:]
    h1 = (jnp.einsum('bfcw,df->bdcw', x0, W1[:, :, 0, 0])
          + jnp.einsum('bfcw,df->bdcw', x1, W1[:, :, 0, 1])
          + b1[None, :, None, None])
    h1 = jax.nn.relu(h1)
    h2 = jnp.einsum('bdcw,edw->bec', h1, W2[:, :, 0, :]) + b2[None, :, None]
    h2 = jax.nn.relu(h2)
    cat = jnp.concatenate([h2, prev_w[:, None, :]], axis=1)
    score = jnp.einsum('bec,e->bc', cat, W3[0, :, 0, 0]) + b3[0]
    logits = jnp.concatenate([jnp.broadcast_to(bias, (B, 1)), score], axis=1)
    return jax.nn.softmax(logits, axis=-1)


if __name__ == "__main__":
    # batch, feature_number, coin_number, window_size
    B, F, C, W = 2, 3, 8, 16
    key = jax.random.PRNGKey(0)
    kx, kw, kp = jax.random.split(key, 3)
    x = jax.random.uniform(kx, (B, F, C, W), jnp.float32, 0.5, 1.5)   # positive "prices"
    prev_w = jax.nn.softmax(jax.random.normal(kp, (B, C), jnp.float32), axis=-1)
    params = init_params(kw, F, C, W)

    fwd = jax.jit(network_forward)
    out = jax.block_until_ready(fwd(x, prev_w, params))
    ref = reference_forward(x, prev_w, params)
    assert out.shape == (B, C + 1), out.shape
    # rtol covers the EUP approximate reciprocal in the softmax denominator.
    assert jnp.allclose(out, ref, rtol=5e-3, atol=1e-5), (out, ref)

    # Larger batch: multi-tile "parallel" grid (nb >= 2), coin padding (C % 8 != 0),
    # and bf16-fed x (the HBM-roofline lever); checked at bf16-appropriate tolerance.
    B2, C2 = 48, 11
    kx2, kw2, kp2 = jax.random.split(jax.random.PRNGKey(1), 3)
    x2 = jax.random.uniform(kx2, (B2, F, C2, W), jnp.float32, 0.5, 1.5)
    prev_w2 = jax.nn.softmax(jax.random.normal(kp2, (B2, C2), jnp.float32), axis=-1)
    params2 = init_params(kw2, F, C2, W)
    out2 = jax.block_until_ready(fwd(x2.astype(jnp.bfloat16), prev_w2, params2))
    ref2 = reference_forward(x2, prev_w2, params2)
    assert out2.shape == (B2, C2 + 1), out2.shape
    assert jnp.allclose(out2, ref2, rtol=5e-2, atol=5e-3), (out2, ref2)

    print("KERNEL_OK")
</pallas_src>

<mosaic_0001>
module attributes {stable_mosaic.version = 11 : i64} {
  func.func @_eiie_softmax_kernel(%arg0: i32, %arg1: memref<2x3x8x16xf32, #tpu.memory_space<vmem>>, %arg2: memref<2x8xf32, #tpu.memory_space<vmem>>, %arg3: memref<3x16x45xf32, #tpu.memory_space<vmem>>, %arg4: memref<1x45xf32, #tpu.memory_space<vmem>>, %arg5: memref<45x10xf32, #tpu.memory_space<vmem>>, %arg6: memref<1x10xf32, #tpu.memory_space<vmem>>, %arg7: memref<1x10xf32, #tpu.memory_space<vmem>>, %arg8: memref<1x3xf32, #tpu.memory_space<smem>>, %arg9: memref<2x9xf32, #tpu.memory_space<vmem>>) attributes {dimension_semantics = [#tpu.dimension_semantics<parallel>], iteration_bounds = array<i64: 1>, scalar_prefetch = 0 : i64, scratch_operands = 0 : i64, tpu.core_type = #tpu.core_type<tc>, window_params = [{transform_indices = @transform_0, window_bounds = array<i64: 2, 3, 8, 16>}, {transform_indices = @transform_1, window_bounds = array<i64: 2, 8>}, {pipeline_mode = #tpu.pipeline_mode<synchronous>, transform_indices = @transform_2, window_bounds = array<i64: 3, 16, 45>}, {pipeline_mode = #tpu.pipeline_mode<synchronous>, transform_indices = @transform_3, window_bounds = array<i64: 1, 45>}, {pipeline_mode = #tpu.pipeline_mode<synchronous>, transform_indices = @transform_4, window_bounds = array<i64: 45, 10>}, {pipeline_mode = #tpu.pipeline_mode<synchronous>, transform_indices = @transform_5, window_bounds = array<i64: 1, 10>}, {pipeline_mode = #tpu.pipeline_mode<synchronous>, transform_indices = @transform_6, window_bounds = array<i64: 1, 10>}, {transform_indices = @transform_7, window_bounds = array<i64: 1, 3>}, {transform_indices = @transform_8, window_bounds = array<i64: 2, 9>}]} {
    %c0 = arith.constant 0 : index
    %c0_0 = arith.constant 0 : index
    %c0_1 = arith.constant 0 : index
    %c0_2 = arith.constant 0 : index
    %0 = vector.load %arg1[%c0, %c0_0, %c0_1, %c0_2] : memref<2x3x8x16xf32, #tpu.memory_space<vmem>>, vector<2x3x8x16xf32>
    %1 = vector.extract_strided_slice %0 {offsets = [0, 0, 0, 15], sizes = [2, 1, 8, 1], strides = [1, 1, 1, 1]} : vector<2x3x8x16xf32> to vector<2x1x8x1xf32>
    %2 = vector.shape_cast %1 : vector<2x1x8x1xf32> to vector<2x8x1xf32>
    %3 = tpu.reciprocal %2 : vector<2x8x1xf32> -> vector<2x8x1xf32>
    %4 = vector.extract_strided_slice %0 {offsets = [0, 0, 0, 0], sizes = [2, 1, 8, 16], strides = [1, 1, 1, 1]} : vector<2x3x8x16xf32> to vector<2x1x8x16xf32>
    %5 = vector.shape_cast %4 : vector<2x1x8x16xf32> to vector<2x8x16xf32>
    %6 = vector.broadcast %3 : vector<2x8x1xf32> to vector<2x8x16xf32>
    %7 = arith.mulf %5, %6 : vector<2x8x16xf32>
    %8 = vector.shape_cast %7 : vector<2x8x16xf32> to vector<16x16xf32>
    %c0_3 = arith.constant 0 : index
    %c0_4 = arith.constant 0 : index
    %c0_5 = arith.constant 0 : index
    %9 = vector.load %arg3[%c0_3, %c0_4, %c0_5] : memref<3x16x45xf32, #tpu.memory_space<vmem>>, vector<1x16x45xf32>
    %10 = vector.shape_cast %9 : vector<1x16x45xf32> to vector<16x45xf32>
    %cst = arith.constant dense<0.000000e+00> : vector<16x45xf32>
    %11 = tpu.matmul %8, %10, %cst {dimension_numbers = #tpu.dot_dimension_numbers<[1], [0], [0], [1], [0, 0, 1, 1], [], []>} : vector<16x16xf32>, vector<16x45xf32>, vector<16x45xf32> -> vector<16x45xf32>
    %12 = vector.extract_strided_slice %0 {offsets = [0, 1, 0, 0], sizes = [2, 1, 8, 16], strides = [1, 1, 1, 1]} : vector<2x3x8x16xf32> to vector<2x1x8x16xf32>
    %13 = vector.shape_cast %12 : vector<2x1x8x16xf32> to vector<2x8x16xf32>
    %14 = vector.broadcast %3 : vector<2x8x1xf32> to vector<2x8x16xf32>
    %15 = arith.mulf %13, %14 : vector<2x8x16xf32>
    %16 = vector.shape_cast %15 : vector<2x8x16xf32> to vector<16x16xf32>
    %c1 = arith.constant 1 : index
    %c0_6 = arith.constant 0 : index
    %c0_7 = arith.constant 0 : index
    %17 = vector.load %arg3[%c1, %c0_6, %c0_7] : memref<3x16x45xf32, #tpu.memory_space<vmem>>, vector<1x16x45xf32>
    %18 = vector.shape_cast %17 : vector<1x16x45xf32> to vector<16x45xf32>
    %cst_8 = arith.constant dense<0.000000e+00> : vector<16x45xf32>
    %19 = tpu.matmul %16, %18, %cst_8 {dimension_numbers = #tpu.dot_dimension_numbers<[1], [0], [0], [1], [0, 0, 1, 1], [], []>} : vector<16x16xf32>, vector<16x45xf32>, vector<16x45xf32> -> vector<16x45xf32>
    %20 = arith.addf %11, %19 : vector<16x45xf32>
    %21 = vector.extract_strided_slice %0 {offsets = [0, 2, 0, 0], sizes = [2, 1, 8, 16], strides = [1, 1, 1, 1]} : vector<2x3x8x16xf32> to vector<2x1x8x16xf32>
    %22 = vector.shape_cast %21 : vector<2x1x8x16xf32> to vector<2x8x16xf32>
    %23 = vector.broadcast %3 : vector<2x8x1xf32> to vector<2x8x16xf32>
    %24 = arith.mulf %22, %23 : vector<2x8x16xf32>
    %25 = vector.shape_cast %24 : vector<2x8x16xf32> to vector<16x16xf32>
    %c2 = arith.constant 2 : index
    %c0_9 = arith.constant 0 : index
    %c0_10 = arith.constant 0 : index
    %26 = vector.load %arg3[%c2, %c0_9, %c0_10] : memref<3x16x45xf32, #tpu.memory_space<vmem>>, vector<1x16x45xf32>
    %27 = vector.shape_cast %26 : vector<1x16x45xf32> to vector<16x45xf32>
    %cst_11 = arith.constant dense<0.000000e+00> : vector<16x45xf32>
    %28 = tpu.matmul %25, %27, %cst_11 {dimension_numbers = #tpu.dot_dimension_numbers<[1], [0], [0], [1], [0, 0, 1, 1], [], []>} : vector<16x16xf32>, vector<16x45xf32>, vector<16x45xf32> -> vector<16x45xf32>
    %29 = arith.addf %20, %28 : vector<16x45xf32>
    %c0_12 = arith.constant 0 : index
    %c0_13 = arith.constant 0 : index
    %30 = vector.load %arg4[%c0_12, %c0_13] : memref<1x45xf32, #tpu.memory_space<vmem>>, vector<1x45xf32>
    %31 = vector.broadcast %30 : vector<1x45xf32> to vector<16x45xf32>
    %32 = arith.addf %29, %31 : vector<16x45xf32>
    %cst_14 = arith.constant 0.000000e+00 : f32
    %33 = vector.broadcast %cst_14 : f32 to vector<16x45xf32>
    %34 = arith.maximumf %32, %33 : vector<16x45xf32>
    %c0_15 = arith.constant 0 : index
    %c0_16 = arith.constant 0 : index
    %35 = vector.load %arg5[%c0_15, %c0_16] : memref<45x10xf32, #tpu.memory_space<vmem>>, vector<45x10xf32>
    %cst_17 = arith.constant dense<0.000000e+00> : vector<16x10xf32>
    %36 = tpu.matmul %34, %35, %cst_17 {dimension_numbers = #tpu.dot_dimension_numbers<[1], [0], [0], [1], [0, 0, 1, 1], [], []>} : vector<16x45xf32>, vector<45x10xf32>, vector<16x10xf32> -> vector<16x10xf32>
    %c0_18 = arith.constant 0 : index
    %c0_19 = arith.constant 0 : index
    %37 = vector.load %arg6[%c0_18, %c0_19] : memref<1x10xf32, #tpu.memory_space<vmem>>, vector<1x10xf32>
    %38 = vector.broadcast %37 : vector<1x10xf32> to vector<16x10xf32>
    %39 = arith.addf %36, %38 : vector<16x10xf32>
    %cst_20 = arith.constant 0.000000e+00 : f32
    %40 = vector.broadcast %cst_20 : f32 to vector<16x10xf32>
    %41 = arith.maximumf %39, %40 : vector<16x10xf32>
    %42 = vector.shape_cast %41 : vector<16x10xf32> to vector<2x8x10xf32>
    %c0_21 = arith.constant 0 : index
    %c0_22 = arith.constant 0 : index
    %43 = memref.load %arg8[%c0_21, %c0_22] : memref<1x3xf32, #tpu.memory_space<smem>>
    %c0_23 = arith.constant 0 : index
    %c1_24 = arith.constant 1 : index
    %44 = memref.load %arg8[%c0_23, %c1_24] : memref<1x3xf32, #tpu.memory_space<smem>>
    %c0_25 = arith.constant 0 : index
    %c2_26 = arith.constant 2 : index
    %45 = memref.load %arg8[%c0_25, %c2_26] : memref<1x3xf32, #tpu.memory_space<smem>>
    %c0_27 = arith.constant 0 : index
    %c0_28 = arith.constant 0 : index
    %46 = vector.load %arg7[%c0_27, %c0_28] : memref<1x10xf32, #tpu.memory_space<vmem>>, vector<1x10xf32>
    %47 = vector.shape_cast %46 : vector<1x10xf32> to vector<1x1x10xf32>
    %48 = vector.broadcast %47 : vector<1x1x10xf32> to vector<2x8x10xf32>
    %49 = arith.mulf %42, %48 : vector<2x8x10xf32>
    %cst_29 = arith.constant dense<0.000000e+00> : vector<2x8xf32>
    %50 = vector.multi_reduction <add>, %49, %cst_29 [2] : vector<2x8x10xf32> to vector<2x8xf32>
    %c0_30 = arith.constant 0 : index
    %c0_31 = arith.constant 0 : index
    %51 = vector.load %arg2[%c0_30, %c0_31] : memref<2x8xf32, #tpu.memory_space<vmem>>, vector<2x8xf32>
    %52 = vector.broadcast %43 : f32 to vector<2x8xf32>
    %53 = arith.mulf %51, %52 : vector<2x8xf32>
    %54 = arith.addf %50, %53 : vector<2x8xf32>
    %55 = vector.broadcast %44 : f32 to vector<2x8xf32>
    %56 = arith.addf %54, %55 : vector<2x8xf32>
    %57 = vector.broadcast %45 : f32 to vector<2x1xf32>
    %58 = tpu.concatenate %57, %56 in 1 : vector<2x1xf32>, vector<2x8xf32> -> vector<2x9xf32>
    %cst_32 = arith.constant dense<0xFF800000> : vector<2xf32>
    %59 = vector.multi_reduction <maximumf>, %58, %cst_32 [1] : vector<2x9xf32> to vector<2xf32>
    %60 = vector.shape_cast %59 : vector<2xf32> to vector<2x1xf32>
    %61 = vector.broadcast %60 : vector<2x1xf32> to vector<2x9xf32>
    %62 = arith.subf %58, %61 : vector<2x9xf32>
    %63 = math.exp %62 : vector<2x9xf32>
    %cst_33 = arith.constant dense<0.000000e+00> : vector<2xf32>
    %64 = vector.multi_reduction <add>, %63, %cst_33 [1] : vector<2x9xf32> to vector<2xf32>
    %65 = vector.shape_cast %64 : vector<2xf32> to vector<2x1xf32>
    %66 = tpu.reciprocal %65 {approx = true} : vector<2x1xf32> -> vector<2x1xf32>
    %67 = vector.broadcast %66 : vector<2x1xf32> to vector<2x9xf32>
    %68 = arith.mulf %63, %67 : vector<2x9xf32>
    %c0_34 = arith.constant 0 : index
    %c0_35 = arith.constant 0 : index
    %69 = vector.load %arg9[%c0_34, %c0_35] : memref<2x9xf32, #tpu.memory_space<vmem>>, vector<2x9xf32>
    tpu.vector_store %arg9[%c0_34, %c0_35], %68 {strides = array<i32>} : memref<2x9xf32, #tpu.memory_space<vmem>>, vector<2x9xf32>,
    return
  }
  func.func @transform_0(%arg0: i32) -> (i32, i32, i32, i32) {
    %c0_i32 = arith.constant 0 : i32
    %c0_i32_0 = arith.constant 0 : i32
    %c0_i32_1 = arith.constant 0 : i32
    %c0_i32_2 = arith.constant 0 : i32
    return %arg0, %c0_i32, %c0_i32_0, %c0_i32_1 : i32, i32, i32, i32
  }
  func.func @transform_1(%arg0: i32) -> (i32, i32) {
    %c0_i32 = arith.constant 0 : i32
    %c0_i32_0 = arith.constant 0 : i32
    return %arg0, %c0_i32 : i32, i32
  }
  func.func @transform_2(%arg0: i32) -> (i32, i32, i32) {
    %c0_i32 = arith.constant 0 : i32
    %c0_i32_0 = arith.constant 0 : i32
    %c0_i32_1 = arith.constant 0 : i32
    %c0_i32_2 = arith.constant 0 : i32
    return %c0_i32, %c0_i32_0, %c0_i32_1 : i32, i32, i32
  }
  func.func @transform_3(%arg0: i32) -> (i32, i32) {
    %c0_i32 = arith.constant 0 : i32
    %c0_i32_0 = arith.constant 0 : i32
    %c0_i32_1 = arith.constant 0 : i32
    return %c0_i32, %c0_i32_0 : i32, i32
  }
  func.func @transform_4(%arg0: i32) -> (i32, i32) {
    %c0_i32 = arith.constant 0 : i32
    %c0_i32_0 = arith.constant 0 : i32
    %c0_i32_1 = arith.constant 0 : i32
    return %c0_i32, %c0_i32_0 : i32, i32
  }
  func.func @transform_5(%arg0: i32) -> (i32, i32) {
    %c0_i32 = arith.constant 0 : i32
    %c0_i32_0 = arith.constant 0 : i32
    %c0_i32_1 = arith.constant 0 : i32
    return %c0_i32, %c0_i32_0 : i32, i32
  }
  func.func @transform_6(%arg0: i32) -> (i32, i32) {
    %c0_i32 = arith.constant 0 : i32
    %c0_i32_0 = arith.constant 0 : i32
    %c0_i32_1 = arith.constant 0 : i32
    return %c0_i32, %c0_i32_0 : i32, i32
  }
  func.func @transform_7(%arg0: i32) -> (i32, i32) {
    %c0_i32 = arith.constant 0 : i32
    %c0_i32_0 = arith.constant 0 : i32
    %c0_i32_1 = arith.constant 0 : i32
    return %c0_i32, %c0_i32_0 : i32, i32
  }
  func.func @transform_8(%arg0: i32) -> (i32, i32) {
    %c0_i32 = arith.constant 0 : i32
    %c0_i32_0 = arith.constant 0 : i32
    return %arg0, %c0_i32 : i32, i32
  }
}

</mosaic_0001>

<bundles_post_ra>
// kernel: network_forward.1
= control target key start
LH: loop header
LB: loop body
LE: loop exit
PB: predicated region body
PF: predicated region fallthrough
CT: control target
= control target key end

     0   :  { %13 = vsyncpa [#allocation4], 0  ;;  %s533_s0 = inlined_call_operand.vmem [shape: f32[2,3,8,16], index: 0, kind: input, shape index: {}]   ;;  %s534_s1 = inlined_call_operand.vmem [shape: f32[2,8], index: 1, kind: input, shape index: {}]   ;;  %s535_s2 = inlined_call_operand.vmem [shape: f32[3,16,45], index: 2, kind: input, shape index: {}]   ;;  %s536_s3 = inlined_call_operand.vmem [shape: f32[1,45], index: 3, kind: input, shape index: {}]   ;;  %s537_s4 = inlined_call_operand.vmem [shape: f32[45,10], index: 4, kind: input, shape index: {}]   ;;  %s538_s5 = inlined_call_operand.vmem [shape: f32[1,10], index: 5, kind: input, shape index: {}]   ;;  %s539_s6 = inlined_call_operand.vmem [shape: f32[1,10], index: 6, kind: input, shape index: {}]   ;;  %s540_s7 = inlined_call_operand.vmem [shape: f32[1,3], index: 7, kind: input, shape index: {}]   ;;  %s541_s8 = inlined_call_operand.hbm [shape: f32[2,9], index: 8, kind: output, shape index: {}]  }
   0x1   :  { %14 = vsyncpa [#allocation3], 0  ;;  %s34_s29 = sshll.u32 %s540_s7, 4  ;;  %s409_s30 = smov [#allocation2]   ;;  %s35_s29 = int_to_ptr.vmem [resolvable:$true] %s34_s29 }
   0x2   :  { %37 = dma.vmem_to_smem %s35_s29, 16, %s409_s30, [#allocation4]  }
   0x3   :  { %405 = dma.done.wait [#allocation4], 16  }
   0x4   :  { %406 = vsyncadd [#allocation4], 4294967280 }
   0x5   :  { %42 = sfence }
   0x6   :  { %v43_v0 = vld [vmem:[%s533_s0] sm:$0xff]  ;;  %v46_v1 = vld [vmem:[%s533_s0 + $0x18] sm:$0xff]  ;;  %v410_v3 = vmov 15   ;;  %v90_v4 = vld [vmem:[%s535_s2 + $0x8] sm:$0xff]  ;;  %vm96_vm8 = vcmask 130048   ;;  %vm216_vm9 = vcmask 1044480   ;;  %v266_v62 = vlaneseq }
   0x7   :  { %v336_v2 = vld [vmem:[%s535_s2 + $0x18] sm:$0xff]  ;;  %354 = vset.pattern.permute.xlu0 %v410_v3  ;;  %361 = vrcp.f32 %v43_v0  ;;  %v342_v5 = vld [vmem:[%s535_s2 + $0x28] sm:$0xff]  ;;  %146 = vmatpush.msra.mxu1 %v90_v4  ;;  %v60_v9 = vand.u32 2147483648, %v43_v0  ;;  %vm54_vm0 = vweird.f32 %v43_v0  ;;  %v58_v12 = vand.u32 2147483647, %v43_v0  ;;  %v335_v26 = vld [vmem:[%s535_s2 + $0x10] sm:$0xff] }
   0x8   :  { %117 = vmatpush.msra.mxu0 %v336_v2  ;;  %363 = vrcp.f32 %v46_v1  ;;  %180 = vmatpush.msra.mxu2 %v342_v5  ;;  %vm68_vm4 = vweird.f32 %v46_v1  ;;  %v74_v18 = vand.u32 2147483648, %v46_v1  ;;  %v72_v21 = vand.u32 2147483647, %v46_v1  ;;  %v89_v27 = vld [vmem:[%s535_s2] sm:$0xff]  ;;  %v44_v29 = vld [vmem:[%s533_s0 + $0x8] sm:$0xff]  ;;  %v45_v30 = vld [vmem:[%s533_s0 + $0x10] sm:$0xff] }
   0x9   :  { %v61_v15 = vor.u32 1.1754944e-38, %v60_v9  ;;  %vm59_vm3 = vcmp.eq.f32.partialorder %v58_v12, 8.507059e+37  ;;  %v341_v28 = vld [vmem:[%s535_s2 + $0x20] sm:$0xff]  ;;  %147 = vmatpush.msra.mxu1 %v89_v27  ;;  %v48_v36 = vld [vmem:[%s533_s0 + $0x28] sm:$0xff]  ;;  %v202_v43 = vld [vmem:[%s537_s4 + $0x18] sm:$0xff]  ;;  %vm209_vm10 = vcmask 367616  }
   0xa   :  { %v75_v23 = vor.u32 1.1754944e-38, %v74_v18  ;;  %vm73_vm7 = vcmp.eq.f32.partialorder %v72_v21, 8.507059e+37  ;;  %118 = vmatpush.msra.mxu0 %v335_v26  ;;  %181 = vmatpush.msra.mxu2 %v341_v28  ;;  %v47_v35 = vld [vmem:[%s533_s0 + $0x20] sm:$0xff]  ;;  %v204_v41 = vld [vmem:[%s537_s4 + $0x28] sm:$0x1f]  ;;  %v201_v44 = vld [vmem:[%s537_s4 + $0x10] sm:$0xff] }
   0xb   :  { %v203_v42 = vld [vmem:[%s537_s4 + $0x20] sm:$0xff]  ;;  %345 = vmatpush.msk.msra.mxu3 %vm216_vm9, %v204_v41  ;;  %v200_v45 = vld [vmem:[%s537_s4 + $0x8] sm:$0xff]  ;;  %v267_v63 = vshrl.u32 %v266_v62, 7  ;;  %vm254_vm11 = vcmask 80896   ;;  %v296_v27 = vand.u32 127, %v266_v62  ;;  %vm300_vm12 = vcmask 1041409  }
   0xc   :  { %v199_v46 = vld [vmem:[%s537_s4] sm:$0xff]  ;;  %s245_s4 = sld [smem:[#allocation2]]  ;;  %vm303_vm13 = vcmask 7168   ;;  %vm305_vm14 = vcmask 66560   ;;  %s325_s28 = sshll.u32 %s541_s8, 4  ;;  %s326_s28 = int_to_ptr.hbm [resolvable:$true] %s325_s28 }
   0xd   :  { %v362_v6 = vpop.eup %361  ;;  %231 = vmatpush.msra.mxu3 %v203_v42  ;;  %v358_v50 = vld [vmem:[%s536_s3] ss:$0 sm:$0xff]  ;;  %355 = vset.pattern.permute.xlu2 %v267_v63  ;;  %v297_v28 = vadd.s32 4294967295, %v296_v27 }
   0xe   :  { %v364_v7 = vpop.eup %363  ;;  %v50_v8 = vmul.f32 %v362_v6, %v43_v0  ;;  %vm55_vm1 = vweird.f32 %v362_v6  ;;  %v359_v4 = vld [vmem:[%s538_s5] ss:$0 sm:$0xff]  ;;  %s349_s5 = sld [smem:[#allocation2 + $0x2]] }
   0xf   :  { %v64_v10 = vmul.f32 %v364_v7, %v46_v1  ;;  %vm56_vm2 = vmor %vm54_vm0, %vm55_vm1  ;;  %vm69_vm5 = vweird.f32 %v364_v7  ;;  %232 = vmatpush.msra.mxu3 %v202_v43 }
  0x10   :  { %v51_v11 = vsub.f32 1.0, %v50_v8  ;;  %vm70_vm6 = vmor %vm68_vm4, %vm69_vm5  ;;  %v360_v8 = vld [vmem:[%s539_s6] ss:$0 sm:$0xff]  ;;  %s412_s6 = smov [#allocation5]  }
  0x11   :  { %v65_v13 = vsub.f32 1.0, %v64_v10  ;;  %233 = vmatpush.msra.mxu3 %v201_v44  ;;  %s323_s26 = sshll.u32 %s412_s6, 4  ;;  %s324_s26 = int_to_ptr.vmem [resolvable:$true] %s323_s26 }
  0x12   :  { %v52_v14 = vmul.f32 %v362_v6, %v51_v11 }
  0x13   :  { %v66_v16 = vmul.f32 %v364_v7, %v65_v13  ;;  %234 = vmatpush.msra.mxu3 %v200_v45 }
  0x14   :  { %v53_v17 = vadd.f32 %v362_v6, %v52_v14 }
  0x15   :  { %v67_v20 = vadd.f32 %v364_v7, %v66_v16  ;;  %235 = vmatpush.msra.mxu3 %v199_v46 }
  0x16   :  { %v57_v19 = vsel %vm56_vm2, %v362_v6, %v53_v17  ;;  %v411_v17 = vmov 0  }
  0x17   :  { %v62_v22 = vsel %vm59_vm3, %v61_v15, %v57_v19  ;;  %v71_v24 = vsel %vm70_vm6, %v364_v7, %v67_v20  ;;  %357 = vset.pattern.permute.xlu1 %v411_v17 }
  0x18   :  { %79 = vperm.xlu0 %354, %v62_v22   ;;  %v76_v25 = vsel %vm73_vm7, %v75_v23, %v71_v24 }
  0x20   :  { %84 = vperm.xlu0 %354, %v76_v25  }
  0x28   :  { %356 = vset.pattern.permute.xlu0 %v411_v17 }
  0x8a   :  { %v80_v31 = vpop.permute.xlu0 %79 }
  0x8b   :  { %v87_v32 = vmul.f32 %v80_v31, %v43_v0  ;;  %v91_v33 = vmul.f32 %v80_v31, %v44_v29  ;;  %v155_v34 = vmul.f32 %v80_v31, %v45_v30  ;;  %v261_v0 = vld [vmem:[%s534_s1] sm:$0x3]  ;;  %s348_s1 = sld [smem:[#allocation2 + $0x1]] }
  0x8d   :  { %337 = vmatmul.msk.f32.vlgmr.msra.gmra.mxu0 %vm96_vm8, %v91_v33  ;;  %339 = vmatmul.msk.f32.vlgmr.msra.gmra.mxu1 %vm96_vm8, %v87_v32  ;;  %v286_v33 = vstv %s349_s5 }
  0x8e   :  { %343 = vmatmul.msk.f32.vlgmr.msra.gmra.mxu2 %vm96_vm8, %v155_v34 }
  0x91   :  { %v283_v19 = vstv %s348_s1 }
  0x92   :  { %v85_v37 = vpop.permute.xlu0 %84 }
  0x93   :  { %v88_v38 = vmul.f32 %v85_v37, %v46_v1  ;;  %v92_v39 = vmul.f32 %v85_v37, %v47_v35  ;;  %v156_v40 = vmul.f32 %v85_v37, %v48_v36  ;;  %v262_v1 = vstv %s245_s4 }
  0x94   :  { %v263_v2 = vmul.f32 %v262_v1, %v261_v0 }
  0x95   :  { %338 = vmatmul.msk.f32.gmra.mxu0 %vm96_vm8, %v92_v39  ;;  %340 = vmatmul.msk.f32.gmra.mxu1 %vm96_vm8, %v88_v38 }
  0x96   :  { %344 = vmatmul.msk.f32.gmra.mxu2 %vm96_vm8, %v156_v40  ;;  %v265_v3 = vperm.slane %v263_v2, 0  ;;  %v272_v5 = vperm.slane %v263_v2, 1 }
  0x98   :  { %270 = vperm.xlu2 %355, %v265_v3  }
  0xa0   :  { %277 = vperm.xlu2 %355, %v272_v5  }
  0xf2   :  { %v271_v18 = vpop.permute.xlu2 %270 }
  0xfa   :  { %v278_v23 = vpop.permute.xlu2 %277 }
 0x10a   :  { %v120_v47 = vpop.f32.mrf.mxu0  ;;  %v149_v48 = vpop.f32.mrf.mxu1 }
 0x10b   :  { %v150_v49 = vadd.f32 %v149_v48, %v120_v47 }
 0x111   :  { %v183_v51 = vpop.f32.mrf.mxu2 }
 0x112   :  { %v189_v52 = vadd.f32 %v183_v51, %v150_v49  ;;  %v123_v54 = vpop.f32.mrf.mxu0  ;;  %v152_v55 = vpop.f32.mrf.mxu1 }
 0x113   :  { %v153_v57 = vadd.f32 %v152_v55, %v123_v54 }
 0x114   :  { %v195_v53 = vadd.f32 %v358_v50, %v189_v52 }
 0x116   :  { %v197_v56 = vmax.f32 %v195_v53, 0.0 }
 0x118   :  { %346 = vmatmul.msk.f32.vlgmr.msra.gmra.mxu3 %vm209_vm10, %v197_v56 }
 0x119   :  { %v186_v58 = vpop.f32.mrf.mxu2 }
 0x11a   :  { %v190_v59 = vadd.f32 %v186_v58, %v153_v57 }
 0x11c   :  { %v196_v60 = vadd.f32 %v358_v50, %v190_v59 }
 0x11e   :  { %v198_v61 = vmax.f32 %v196_v60, 0.0 }
 0x120   :  { %347 = vmatmul.msk.f32.gmra.mxu3 %vm209_vm10, %v198_v61 }
 0x19b   :  { %v237_v6 = vpop.f32.mrf.mxu3 }
 0x19c   :  { %v238_v7 = vadd.f32 %v359_v4, %v237_v6 }
 0x19e   :  { %v243_v9 = vmax.f32 %v238_v7, 0.0 }
 0x1a0   :  { %v252_v10 = vmul.f32 %v360_v8, %v243_v9 }
 0x1a2   :  { %v255_v11 = vsel %vm254_vm11, %v252_v10, 0.0 }
 0x1a3   :  { %256 = vadd.xlane.f32.xlu1 %v255_v11  ;;  %v240_v12 = vpop.f32.mrf.mxu3 }
 0x1a4   :  { %v241_v13 = vadd.f32 %v359_v4, %v240_v12 }
 0x1a6   :  { %v244_v14 = vmax.f32 %v241_v13, 0.0 }
 0x1a8   :  { %v253_v15 = vmul.f32 %v360_v8, %v244_v14 }
 0x1aa   :  { %v258_v16 = vsel %vm254_vm11, %v253_v15, 0.0 }
 0x1ab   :  { %259 = vadd.xlane.f32.xlu1 %v258_v16 }
 0x216   :  { %v257_v20 = vpop.xlane.xlu1 %256 }
 0x217   :  { %v281_v21 = vadd.f32 %v271_v18, %v257_v20 }
 0x219   :  { %v284_v22 = vadd.f32 %v283_v19, %v281_v21 }
 0x21b   :  { %290 = vperm.xlu0 %356, %v284_v22  }
 0x21e   :  { %v260_v24 = vpop.xlane.xlu1 %259 }
 0x21f   :  { %v282_v25 = vadd.f32 %v278_v23, %v260_v24 }
 0x221   :  { %v285_v26 = vadd.f32 %v283_v19, %v282_v25 }
 0x223   :  { %293 = vperm.xlu1 %357, %v285_v26  }
 0x28d   :  { %v291_v29 = vpop.permute.xlu0 %290 }
 0x28e   :  { %v298_v31 = vperm.slane %v291_v29, %v297_v28 }
 0x295   :  { %v294_v30 = vpop.permute.xlu1 %293 }
 0x296   :  { %v299_v32 = vperm.slane %v294_v30, %v297_v28 }
 0x298   :  { %v301_v34 = vsel %vm300_vm12, %v299_v32, %v298_v31 }
 0x299   :  { %v304_v35 = vsel %vm303_vm13, %v286_v33, %v301_v34 }
 0x29a   :  { %v306_v36 = vsel %vm305_vm14, %v304_v35, -inf }
 0x29b   :  { %307 = vmax.xlane.f32.xlu2 %v306_v36 }
 0x30e   :  { %v308_v37 = vpop.xlane.xlu2 %307 }
 0x30f   :  { %v309_v38 = vsub.f32 %v304_v35, %v308_v37 }
 0x311   :  { %v310_v39 = vmul.f32 1.442695, %v309_v38 }
 0x313   :  { %365 = vpow2.f32 %v310_v39 }
 0x319   :  { %v366_v40 = vpop.eup %365 }
 0x31a   :  { %v312_v41 = vsel %vm305_vm14, %v366_v40, 0.0 }
 0x31b   :  { %313 = vadd.xlane.f32.xlu0 %v312_v41 }
 0x38e   :  { %v314_v42 = vpop.xlane.xlu0 %313 }
 0x38f   :  { %367 = vrcp.f32 %v314_v42 }
 0x395   :  { %v368_v43 = vpop.eup %367 }
 0x396   :  { %v316_v44 = vmul.f32 %v368_v43, %v366_v40 }
 0x398   :  { %317 = vst.msk [vmem:[#allocation5] sm:$0x3] %vm305_vm14, %v316_v44 }
 0x399   :  { %328 = dma.vmem_to_hbm [thread:$0]  %s324_s26, 32, %s326_s28, [#allocation3]  }
 0x39a   :  { %407 = dma.done.wait [#allocation3], 32  }
 0x39b   :  { %408 = vsyncadd [#allocation3], 4294967264 }
 0x39c   :  { %333 = vsyncpa [#allocation3], 1 }
 0x39d   :  { %334 = vsyncpa [#allocation4], 1 }

</bundles_post_ra>
